<compile_context>
chip_gen: v7x
topology: tpu7x:2x2x1
jax: 0.10.0
libtpu: 0.0.40
codegen_flags: <defaults>
</compile_context>

<pallas_src>
import jax
import jax.numpy as jnp
from jax.experimental import pallas as pl
from jax.experimental.pallas import tpu as pltpu


_NEG = -1e30  # masks softmax / log-softmax padding lanes


def _ru128(n):
    return ((n + 127) // 128) * 128


def _layout(H, L, V):
    """128-aligned segment offsets for the fused weight / packed bias slabs."""
    Lp, Hp, G3, Vp = _ru128(L), _ru128(H), _ru128(3 * H), _ru128(V)
    W1 = Lp + Hp + G3            # width of the fused projection [attn | comb_e | gru_hh]
    off_ih = W1                  # gru b_ih segment in the bias slab
    off_o = W1 + G3              # out-layer bias segment
    Bw = off_o + Vp              # total packed-bias width
    return Lp, Hp, G3, Vp, W1, off_ih, off_o, Bw


def _attn_decoder_gru_kernel(
    tok_ref,     # (T,) int32  scalar prefetch (drives the embedding gather)
    emb_ref,     # (1, 1, H)   bf16  this step's embedding row
    hid_ref,     # (1, H)      f32   initial hidden state
    enc_ref,     # (L, H)      bf16  encoder outputs
    wf_ref,      # (2*Hp, W1)  bf16  fused [attn | comb(emb) | gru_hh] slab
    wc2_ref,     # (H, H)      bf16  attn_combine, attn_applied half
    wih_ref,     # (H, 3H)     bf16  GRU W_ih^T
    wout_ref,    # (H, Vp)     bf16  out W^T (V padded to Vp)
    bias_ref,    # (1, Bw)     f32   packed biases (-1e30 in attn / out pad lanes)
    out_ref,     # (1, 3, outw) f32  row0=log_softmax  row1=h_new  row2=attn_w
    eh_scr,      # (1, 2*Hp)   f32   [emb | 0pad | h | 0pad]; h carried across steps
):
    del tok_ref
    H = wih_ref.shape[0]
    L = enc_ref.shape[0]
    Vp = wout_ref.shape[1]
    Lp, Hp, _, _, W1, off_ih, off_o, _ = _layout(H, L, Vp)

    @pl.when(pl.program_id(0) == 0)
    def _():
        eh_scr[...] = jnp.zeros_like(eh_scr)
        eh_scr[:, Hp:Hp + H] = hid_ref[...]

    # Drop this step's embedding row into the emb lanes of the fused input.
    # TODO(synk): Dropout(p=0.1) is eval-mode identity here.
    eh_scr[:, 0:H] = emb_ref[0].astype(jnp.float32)

    h = eh_scr[:, Hp:Hp + H]                  # (1, H) f32, carried hidden
    eh = eh_scr[...].astype(jnp.bfloat16)     # (1, 2*Hp)

    # One fused projection: [attn(cat(emb,h)) | combine(emb) | W_hh @ h] (+ their biases).
    t = (jnp.dot(eh, wf_ref[...], preferred_element_type=jnp.float32)
         + bias_ref[:, 0:W1])                 # (1, W1)

    # attn_weights = softmax(attn(cat(emb, h))); pad lanes carry -1e30 -> exactly 0.
    scores = t[:, 0:Lp]
    m = jnp.max(scores, axis=1, keepdims=True)
    e = jnp.exp(scores - m)
    attn_w = e * pl.reciprocal(jnp.sum(e, axis=1, keepdims=True), approx=True)  # (1, Lp)

    # attn_applied = attn_weights @ enc_outputs
    applied = jnp.dot(attn_w[:, 0:L].astype(jnp.bfloat16), enc_ref[...],
                      preferred_element_type=jnp.float32)            # (1, H)

    # x = relu(attn_combine(cat(emb, attn_applied)))
    x = t[:, Lp:Lp + H] + jnp.dot(applied.astype(jnp.bfloat16), wc2_ref[...],
                                  preferred_element_type=jnp.float32)
    x = jnp.maximum(x, 0.0)                                          # (1, H)

    # GRU cell, PyTorch gate order [r, z, n]; b_hh already folded into gh.  f32 gate math.
    gi = (jnp.dot(x.astype(jnp.bfloat16), wih_ref[...],
                  preferred_element_type=jnp.float32)
          + bias_ref[:, off_ih:off_ih + 3 * H])                      # (1, 3H)
    gh = t[:, Lp + Hp:Lp + Hp + 3 * H]                               # (1, 3H)
    r = jax.nn.sigmoid(gi[:, 0:H] + gh[:, 0:H])
    z = jax.nn.sigmoid(gi[:, H:2 * H] + gh[:, H:2 * H])
    n = jnp.tanh(gi[:, 2 * H:3 * H] + r * gh[:, 2 * H:3 * H])
    h_new = (1.0 - z) * n + z * h                                    # (1, H) f32
    eh_scr[:, Hp:Hp + H] = h_new                                     # carry to next step

    # out() + log_softmax; pad logits sit at -1e30 so max/sum ignore them.
    logits = (jnp.dot(h_new.astype(jnp.bfloat16), wout_ref[...],
                      preferred_element_type=jnp.float32)
              + bias_ref[:, off_o:off_o + Vp])                       # (1, Vp)
    lm = jnp.max(logits, axis=1, keepdims=True)
    lse = lm + jnp.log(jnp.sum(jnp.exp(logits - lm), axis=1, keepdims=True))
    logp = logits - lse                                              # (1, Vp)

    # Lane-dense row stores (full 128-lane multiples): no pre-clear, no masked stores.
    out_ref[:, 0:1, 0:Vp] = logp[None]
    out_ref[:, 1:2, 0:Hp] = eh_scr[:, Hp:2 * Hp][None]               # [h_new | zeros]
    out_ref[:, 2:3, 0:Lp] = attn_w[None]


def prep_params(params):
    """One-time packing / bf16 casting of parameters into kernel-ready slabs."""
    H = params["gru_wihT"].shape[0]
    V = params["embedding"].shape[0]
    L = params["attn_b"].shape[-1]
    Lp, Hp, _, Vp, W1, off_ih, off_o, Bw = _layout(H, L, V)
    wdt = jnp.bfloat16

    # Fused slab for [emb | h]: rows 0:H read the emb lanes, rows Hp:Hp+H read the h lanes.
    wf = jnp.zeros((2 * Hp, W1), jnp.float32)
    wf = wf.at[0:H, 0:L].set(params["attn_wT"][:H])
    wf = wf.at[Hp:Hp + H, 0:L].set(params["attn_wT"][H:])
    wf = wf.at[0:H, Lp:Lp + H].set(params["comb_wT"][:H])
    wf = wf.at[Hp:Hp + H, Lp + Hp:Lp + Hp + 3 * H].set(params["gru_whhT"])

    wout = jnp.zeros((H, Vp), jnp.float32).at[:, 0:V].set(params["out_wT"])

    # Packed bias slab (f32).  -1e30 in the attn / out pad lanes masks them out of
    # the (log-)softmax so those output rows come out lane-dense.
    bias = jnp.zeros((1, Bw), jnp.float32)
    bias = bias.at[:, L:Lp].set(_NEG)
    bias = bias.at[:, off_o + V:off_o + Vp].set(_NEG)
    bias = bias.at[:, 0:L].set(params["attn_b"])
    bias = bias.at[:, Lp:Lp + H].set(params["comb_b"])
    bias = bias.at[:, Lp + Hp:Lp + Hp + 3 * H].set(params["gru_bhh"])
    bias = bias.at[:, off_ih:off_ih + 3 * H].set(params["gru_bih"])
    bias = bias.at[:, off_o:off_o + V].set(params["out_b"])

    return {
        "H": H, "V": V, "L": L,
        "emb_tbl": params["embedding"].astype(wdt).reshape(V, 1, H),
        "wfused": wf.astype(wdt),
        "wc2": params["comb_wT"][H:].astype(wdt),
        "wih": params["gru_wihT"].astype(wdt),
        "wout": wout.astype(wdt),
        "bias": bias,
    }


def attn_decoder_gru_decode(prepped, tokens, hidden, enc_outputs):
    """Teacher-forced T-step decode in ONE pallas_call (grid=(T,), weights VMEM-resident).

    Returns (log_probs (T, V), final hidden (1, 1, H), attn_weights (T, L)).
    """
    H, V, L = prepped["H"], prepped["V"], prepped["L"]
    Lp, Hp, _, Vp, W1, _, _, Bw = _layout(H, L, V)
    outw = max(Vp, Hp, Lp)

    toks = jnp.asarray(tokens).reshape(-1).astype(jnp.int32)
    T = int(toks.shape[0])
    hid2 = jnp.asarray(hidden).reshape(1, H).astype(jnp.float32)
    enc = jnp.asarray(enc_outputs).astype(jnp.bfloat16)

    def const(shape):
        return pl.BlockSpec(shape, lambda i, tok_ref: (0,) * len(shape))

    grid_spec = pltpu.PrefetchScalarGridSpec(
        num_scalar_prefetch=1,
        grid=(T,),
        in_specs=[
            # Per-step single-row embedding gather driven by the prefetched token ids.
            pl.BlockSpec((1, 1, H), lambda i, tok_ref: (tok_ref[i], 0, 0)),
            const((1, H)),            # initial hidden
            const((L, H)),            # enc_outputs         (resident across steps)
            const((2 * Hp, W1)),      # fused weight slab   (resident across steps)
            const((H, H)),            # attn_combine (applied half)
            const((H, 3 * H)),        # GRU W_ih
            const((H, Vp)),           # out W (V padded)
            const((1, Bw)),           # packed biases
        ],
        out_specs=pl.BlockSpec((1, 3, outw), lambda i, tok_ref: (i, 0, 0)),
        scratch_shapes=[pltpu.VMEM((1, 2 * Hp), jnp.float32)],   # carried [emb | h] row
    )

    packed = pl.pallas_call(
        _attn_decoder_gru_kernel,
        grid_spec=grid_spec,
        out_shape=jax.ShapeDtypeStruct((T, 3, outw), jnp.float32),
        compiler_params=pltpu.CompilerParams(dimension_semantics=("arbitrary",)),
    )(
        toks,
        prepped["emb_tbl"], hid2, enc,
        prepped["wfused"], prepped["wc2"], prepped["wih"], prepped["wout"],
        prepped["bias"],
    )

    logp = packed[:, 0, :V]
    hiddens = packed[:, 1, :H]
    attn_w = packed[:, 2, :L]
    return logp, hiddens[-1].reshape(1, 1, H), attn_w


def attn_decoder_gru_forward(prepped, token, hidden, enc_outputs):
    """Single decode step — matches AttnDecoderGRU.forward(input, hidden, enc_outputs)."""
    return attn_decoder_gru_decode(prepped, jnp.asarray(token).reshape(1),
                                   hidden, enc_outputs)


def make_params(key, hidden_size, output_size, max_length):
    """Deterministic synthetic parameters matching AttnDecoderGRU.__init__ shapes."""
    ks = jax.random.split(key, 10)
    s = 0.1
    H, V, L = hidden_size, output_size, max_length
    return {
        "embedding": s * jax.random.normal(ks[0], (V, H), jnp.float32),
        # Linear weights stored pre-transposed: (in_features, out_features)
        "attn_wT":  s * jax.random.normal(ks[1], (2 * H, L), jnp.float32),
        "attn_b":   s * jax.random.normal(ks[2], (1, L), jnp.float32),
        "comb_wT":  s * jax.random.normal(ks[3], (2 * H, H), jnp.float32),
        "comb_b":   s * jax.random.normal(ks[4], (1, H), jnp.float32),
        "gru_wihT": s * jax.random.normal(ks[5], (H, 3 * H), jnp.float32),
        "gru_whhT": s * jax.random.normal(ks[6], (H, 3 * H), jnp.float32),
        "gru_bih":  s * jax.random.normal(ks[7], (1, 3 * H), jnp.float32),
        "gru_bhh":  s * jax.random.normal(ks[8], (1, 3 * H), jnp.float32),
        "out_wT":   s * jax.random.normal(ks[9], (H, V), jnp.float32),
        "out_b":    jnp.zeros((1, V), jnp.float32),
    }


def reference_forward(params, token, hidden, enc_outputs):
    """Pure-JAX f32 reference mirroring the PyTorch forward (eval mode)."""
    H = hidden.shape[-1]
    emb = params["embedding"][jnp.asarray(token).reshape(())].reshape(1, H)
    h = hidden.reshape(1, H)
    cat1 = jnp.concatenate([emb, h], axis=1)
    aw = jax.nn.softmax(cat1 @ params["attn_wT"] + params["attn_b"], axis=1)
    applied = aw @ enc_outputs
    cat2 = jnp.concatenate([emb, applied], axis=1)
    x = jax.nn.relu(cat2 @ params["comb_wT"] + params["comb_b"])
    gi = x @ params["gru_wihT"] + params["gru_bih"]
    gh = h @ params["gru_whhT"] + params["gru_bhh"]
    r = jax.nn.sigmoid(gi[:, :H] + gh[:, :H])
    z = jax.nn.sigmoid(gi[:, H:2 * H] + gh[:, H:2 * H])
    n = jnp.tanh(gi[:, 2 * H:] + r * gh[:, 2 * H:])
    h_new = (1.0 - z) * n + z * h
    logp = jax.nn.log_softmax(h_new @ params["out_wT"] + params["out_b"], axis=1)
    return logp, h_new.reshape(1, 1, H), aw


def reference_decode(params, tokens, hidden, enc_outputs):
    logps, aws = [], []
    h = hidden
    for t in range(int(tokens.shape[0])):
        logp, h, aw = reference_forward(params, tokens[t], h, enc_outputs)
        logps.append(logp)
        aws.append(aw)
    return jnp.concatenate(logps, axis=0), h, jnp.concatenate(aws, axis=0)


if __name__ == "__main__":
    HIDDEN = 32
    OUTPUT = 64       # vocabulary size
    MAXLEN = 10
    T = 6             # multi-step teacher-forced decode length

    key = jax.random.PRNGKey(0)
    kp, kt, kh, ke = jax.random.split(key, 4)

    params = make_params(kp, HIDDEN, OUTPUT, MAXLEN)
    prepped = prep_params(params)          # one-time host-side packing / bf16 cast

    token = jax.random.randint(kt, (1, 1), 0, OUTPUT, dtype=jnp.int32)   # decoder input id
    hidden = 0.1 * jax.random.normal(kh, (1, 1, HIDDEN), jnp.float32)    # initHidden-like
    enc_outputs = 0.1 * jax.random.normal(ke, (MAXLEN, HIDDEN), jnp.float32)

    # --- single step: matches AttnDecoderGRU.forward ---
    logp, h_new, attn_w = attn_decoder_gru_forward(prepped, token, hidden, enc_outputs)
    jax.block_until_ready((logp, h_new, attn_w))
    ref_logp, ref_h, ref_aw = reference_forward(params, token, hidden, enc_outputs)
    assert logp.shape == (1, OUTPUT) and h_new.shape == (1, 1, HIDDEN) and attn_w.shape == (1, MAXLEN)
    # Weights stream in bf16 (f32 accumulation) -> bf16-level tolerance.
    assert jnp.allclose(logp, ref_logp, atol=2e-2), "log_softmax output mismatch"
    assert jnp.allclose(h_new, ref_h, atol=2e-2), "hidden state mismatch"
    assert jnp.allclose(attn_w, ref_aw, atol=2e-2), "attention weights mismatch"

    # --- multi-step decode: one pallas_call, VMEM-resident weights, carried hidden ---
    tokens = jax.random.randint(kt, (T,), 0, OUTPUT, dtype=jnp.int32)
    logp_t, h_t, aw_t = attn_decoder_gru_decode(prepped, tokens, hidden, enc_outputs)
    jax.block_until_ready((logp_t, h_t, aw_t))
    ref_lt, ref_ht, ref_awt = reference_decode(params, tokens, hidden, enc_outputs)
    assert logp_t.shape == (T, OUTPUT) and aw_t.shape == (T, MAXLEN) and h_t.shape == (1, 1, HIDDEN)
    assert jnp.allclose(logp_t, ref_lt, atol=3e-2), "multi-step log_softmax mismatch"
    assert jnp.allclose(h_t, ref_ht, atol=3e-2), "multi-step hidden mismatch"
    assert jnp.allclose(aw_t, ref_awt, atol=3e-2), "multi-step attention mismatch"

    print("KERNEL_OK")
</pallas_src>

<mosaic_0001>
module attributes {stable_mosaic.version = 11 : i64} {
  func.func @_attn_decoder_gru_kernel(%arg0: i32, %arg1: memref<1xi32, #tpu.memory_space<smem>>, %arg2: memref<1x1x32xbf16, #tpu.memory_space<vmem>>, %arg3: memref<1x32xf32, #tpu.memory_space<vmem>>, %arg4: memref<10x32xbf16, #tpu.memory_space<vmem>>, %arg5: memref<256x384xbf16, #tpu.memory_space<vmem>>, %arg6: memref<32x32xbf16, #tpu.memory_space<vmem>>, %arg7: memref<32x96xbf16, #tpu.memory_space<vmem>>, %arg8: memref<32x128xbf16, #tpu.memory_space<vmem>>, %arg9: memref<1x640xf32, #tpu.memory_space<vmem>>, %arg10: memref<1x3x128xf32, #tpu.memory_space<vmem>>, %arg11: memref<1x256xf32, #tpu.memory_space<vmem>>) attributes {dimension_semantics = [#tpu.dimension_semantics<arbitrary>], iteration_bounds = array<i64: 1>, scalar_prefetch = 1 : i64, scratch_operands = 1 : i64, tpu.core_type = #tpu.core_type<tc>, window_params = [{transform_indices = @transform_0, window_bounds = array<i64: 1, 1, 32>}, {pipeline_mode = #tpu.pipeline_mode<synchronous>, transform_indices = @transform_1, window_bounds = array<i64: 1, 32>}, {pipeline_mode = #tpu.pipeline_mode<synchronous>, transform_indices = @transform_2, window_bounds = array<i64: 10, 32>}, {pipeline_mode = #tpu.pipeline_mode<synchronous>, transform_indices = @transform_3, window_bounds = array<i64: 256, 384>}, {pipeline_mode = #tpu.pipeline_mode<synchronous>, transform_indices = @transform_4, window_bounds = array<i64: 32, 32>}, {pipeline_mode = #tpu.pipeline_mode<synchronous>, transform_indices = @transform_5, window_bounds = array<i64: 32, 96>}, {pipeline_mode = #tpu.pipeline_mode<synchronous>, transform_indices = @transform_6, window_bounds = array<i64: 32, 128>}, {pipeline_mode = #tpu.pipeline_mode<synchronous>, transform_indices = @transform_7, window_bounds = array<i64: 1, 640>}, {transform_indices = @transform_8, window_bounds = array<i64: 1, 3, 128>}]} {
    %c0_i32 = arith.constant 0 : i32
    %0 = arith.cmpi eq, %arg0, %c0_i32 : i32
    %1 = arith.extui %0 : i1 to i32
    %c0_i32_0 = arith.constant 0 : i32
    %2 = arith.cmpi ne, %1, %c0_i32_0 : i32
    scf.if %2 {
      %cst_45 = arith.constant 0.000000e+00 : f32
      %92 = vector.broadcast %cst_45 : f32 to vector<1x256xf32>
      %c0_46 = arith.constant 0 : index
      %c0_47 = arith.constant 0 : index
      %93 = vector.load %arg11[%c0_46, %c0_47] : memref<1x256xf32, #tpu.memory_space<vmem>>, vector<1x256xf32>
      tpu.vector_store %arg11[%c0_46, %c0_47], %92 {strides = array<i32>} : memref<1x256xf32, #tpu.memory_space<vmem>>, vector<1x256xf32>,
      %c0_48 = arith.constant 0 : index
      %c0_49 = arith.constant 0 : index
      %94 = vector.load %arg3[%c0_48, %c0_49] : memref<1x32xf32, #tpu.memory_space<vmem>>, vector<1x32xf32>
      %c0_50 = arith.constant 0 : index
      %c128_51 = arith.constant 128 : index
      %95 = vector.load %arg11[%c0_50, %c128_51] : memref<1x256xf32, #tpu.memory_space<vmem>>, vector<1x32xf32>
      tpu.vector_store %arg11[%c0_50, %c128_51], %94 {strides = array<i32>} : memref<1x256xf32, #tpu.memory_space<vmem>>, vector<1x32xf32>,
    } else {
    }
    %c0 = arith.constant 0 : index
    %c0_1 = arith.constant 0 : index
    %c0_2 = arith.constant 0 : index
    %3 = vector.load %arg2[%c0, %c0_1, %c0_2] : memref<1x1x32xbf16, #tpu.memory_space<vmem>>, vector<1x1x32xbf16>
    %4 = vector.shape_cast %3 : vector<1x1x32xbf16> to vector<1x32xbf16>
    %5 = arith.extf %4 : vector<1x32xbf16> to vector<1x32xf32>
    %c0_3 = arith.constant 0 : index
    %c0_4 = arith.constant 0 : index
    %6 = vector.load %arg11[%c0_3, %c0_4] : memref<1x256xf32, #tpu.memory_space<vmem>>, vector<1x32xf32>
    tpu.vector_store %arg11[%c0_3, %c0_4], %5 {strides = array<i32>} : memref<1x256xf32, #tpu.memory_space<vmem>>, vector<1x32xf32>,
    %c0_5 = arith.constant 0 : index
    %c128 = arith.constant 128 : index
    %7 = vector.load %arg11[%c0_5, %c128] : memref<1x256xf32, #tpu.memory_space<vmem>>, vector<1x32xf32>
    %c0_6 = arith.constant 0 : index
    %c0_7 = arith.constant 0 : index
    %8 = vector.load %arg11[%c0_6, %c0_7] : memref<1x256xf32, #tpu.memory_space<vmem>>, vector<1x256xf32>
    %9 = arith.truncf %8 : vector<1x256xf32> to vector<1x256xbf16>
    %c0_8 = arith.constant 0 : index
    %c0_9 = arith.constant 0 : index
    %10 = vector.load %arg5[%c0_8, %c0_9] : memref<256x384xbf16, #tpu.memory_space<vmem>>, vector<256x384xbf16>
    %cst = arith.constant dense<0.000000e+00> : vector<1x384xf32>
    %11 = tpu.matmul %9, %10, %cst {dimension_numbers = #tpu.dot_dimension_numbers<[1], [0], [0], [1], [0, 0, 1, 1], [], []>} : vector<1x256xbf16>, vector<256x384xbf16>, vector<1x384xf32> -> vector<1x384xf32>
    %c0_10 = arith.constant 0 : index
    %c0_11 = arith.constant 0 : index
    %12 = vector.load %arg9[%c0_10, %c0_11] : memref<1x640xf32, #tpu.memory_space<vmem>>, vector<1x384xf32>
    %13 = arith.addf %11, %12 : vector<1x384xf32>
    %14 = vector.extract_strided_slice %13 {offsets = [0, 0], sizes = [1, 128], strides = [1, 1]} : vector<1x384xf32> to vector<1x128xf32>
    %cst_12 = arith.constant dense<0xFF800000> : vector<1xf32>
    %15 = vector.multi_reduction <maximumf>, %14, %cst_12 [1] : vector<1x128xf32> to vector<1xf32>
    %16 = vector.shape_cast %15 : vector<1xf32> to vector<1x1xf32>
    %17 = vector.broadcast %16 : vector<1x1xf32> to vector<1x128xf32>
    %18 = arith.subf %14, %17 : vector<1x128xf32>
    %19 = math.exp %18 : vector<1x128xf32>
    %cst_13 = arith.constant dense<0.000000e+00> : vector<1xf32>
    %20 = vector.multi_reduction <add>, %19, %cst_13 [1] : vector<1x128xf32> to vector<1xf32>
    %21 = vector.shape_cast %20 : vector<1xf32> to vector<1x1xf32>
    %22 = tpu.reciprocal %21 {approx = true} : vector<1x1xf32> -> vector<1x1xf32>
    %23 = vector.broadcast %22 : vector<1x1xf32> to vector<1x128xf32>
    %24 = arith.mulf %19, %23 : vector<1x128xf32>
    %25 = vector.extract_strided_slice %24 {offsets = [0, 0], sizes = [1, 10], strides = [1, 1]} : vector<1x128xf32> to vector<1x10xf32>
    %26 = arith.truncf %25 : vector<1x10xf32> to vector<1x10xbf16>
    %c0_14 = arith.constant 0 : index
    %c0_15 = arith.constant 0 : index
    %27 = vector.load %arg4[%c0_14, %c0_15] : memref<10x32xbf16, #tpu.memory_space<vmem>>, vector<10x32xbf16>
    %cst_16 = arith.constant dense<0.000000e+00> : vector<1x32xf32>
    %28 = tpu.matmul %26, %27, %cst_16 {dimension_numbers = #tpu.dot_dimension_numbers<[1], [0], [0], [1], [0, 0, 1, 1], [], []>} : vector<1x10xbf16>, vector<10x32xbf16>, vector<1x32xf32> -> vector<1x32xf32>
    %29 = vector.extract_strided_slice %13 {offsets = [0, 128], sizes = [1, 32], strides = [1, 1]} : vector<1x384xf32> to vector<1x32xf32>
    %30 = arith.truncf %28 : vector<1x32xf32> to vector<1x32xbf16>
    %c0_17 = arith.constant 0 : index
    %c0_18 = arith.constant 0 : index
    %31 = vector.load %arg6[%c0_17, %c0_18] : memref<32x32xbf16, #tpu.memory_space<vmem>>, vector<32x32xbf16>
    %cst_19 = arith.constant dense<0.000000e+00> : vector<1x32xf32>
    %32 = tpu.matmul %30, %31, %cst_19 {dimension_numbers = #tpu.dot_dimension_numbers<[1], [0], [0], [1], [0, 0, 1, 1], [], []>} : vector<1x32xbf16>, vector<32x32xbf16>, vector<1x32xf32> -> vector<1x32xf32>
    %33 = arith.addf %29, %32 : vector<1x32xf32>
    %cst_20 = arith.constant 0.000000e+00 : f32
    %34 = vector.broadcast %cst_20 : f32 to vector<1x32xf32>
    %35 = arith.maximumf %33, %34 : vector<1x32xf32>
    %36 = arith.truncf %35 : vector<1x32xf32> to vector<1x32xbf16>
    %c0_21 = arith.constant 0 : index
    %c0_22 = arith.constant 0 : index
    %37 = vector.load %arg7[%c0_21, %c0_22] : memref<32x96xbf16, #tpu.memory_space<vmem>>, vector<32x96xbf16>
    %cst_23 = arith.constant dense<0.000000e+00> : vector<1x96xf32>
    %38 = tpu.matmul %36, %37, %cst_23 {dimension_numbers = #tpu.dot_dimension_numbers<[1], [0], [0], [1], [0, 0, 1, 1], [], []>} : vector<1x32xbf16>, vector<32x96xbf16>, vector<1x96xf32> -> vector<1x96xf32>
    %c0_24 = arith.constant 0 : index
    %c384 = arith.constant 384 : index
    %39 = vector.load %arg9[%c0_24, %c384] : memref<1x640xf32, #tpu.memory_space<vmem>>, vector<1x96xf32>
    %40 = arith.addf %38, %39 : vector<1x96xf32>
    %41 = vector.extract_strided_slice %13 {offsets = [0, 256], sizes = [1, 96], strides = [1, 1]} : vector<1x384xf32> to vector<1x96xf32>
    %42 = vector.extract_strided_slice %40 {offsets = [0, 0], sizes = [1, 32], strides = [1, 1]} : vector<1x96xf32> to vector<1x32xf32>
    %43 = vector.extract_strided_slice %41 {offsets = [0, 0], sizes = [1, 32], strides = [1, 1]} : vector<1x96xf32> to vector<1x32xf32>
    %44 = arith.addf %42, %43 : vector<1x32xf32>
    %45 = arith.negf %44 : vector<1x32xf32>
    %46 = math.exp %45 : vector<1x32xf32>
    %cst_25 = arith.constant 1.000000e+00 : f32
    %47 = vector.broadcast %cst_25 : f32 to vector<1x32xf32>
    %48 = arith.addf %47, %46 : vector<1x32xf32>
    %49 = arith.divf %47, %48 : vector<1x32xf32>
    %50 = vector.extract_strided_slice %40 {offsets = [0, 32], sizes = [1, 32], strides = [1, 1]} : vector<1x96xf32> to vector<1x32xf32>
    %51 = vector.extract_strided_slice %41 {offsets = [0, 32], sizes = [1, 32], strides = [1, 1]} : vector<1x96xf32> to vector<1x32xf32>
    %52 = arith.addf %50, %51 : vector<1x32xf32>
    %53 = arith.negf %52 : vector<1x32xf32>
    %54 = math.exp %53 : vector<1x32xf32>
    %cst_26 = arith.constant 1.000000e+00 : f32
    %55 = vector.broadcast %cst_26 : f32 to vector<1x32xf32>
    %56 = arith.addf %55, %54 : vector<1x32xf32>
    %57 = arith.divf %55, %56 : vector<1x32xf32>
    %58 = vector.extract_strided_slice %40 {offsets = [0, 64], sizes = [1, 32], strides = [1, 1]} : vector<1x96xf32> to vector<1x32xf32>
    %59 = vector.extract_strided_slice %41 {offsets = [0, 64], sizes = [1, 32], strides = [1, 1]} : vector<1x96xf32> to vector<1x32xf32>
    %60 = arith.mulf %49, %59 : vector<1x32xf32>
    %61 = arith.addf %58, %60 : vector<1x32xf32>
    %62 = math.tanh %61 : vector<1x32xf32>
    %cst_27 = arith.constant 1.000000e+00 : f32
    %63 = vector.broadcast %cst_27 : f32 to vector<1x32xf32>
    %64 = arith.subf %63, %57 : vector<1x32xf32>
    %65 = arith.mulf %64, %62 : vector<1x32xf32>
    %66 = arith.mulf %57, %7 : vector<1x32xf32>
    %67 = arith.addf %65, %66 : vector<1x32xf32>
    %c0_28 = arith.constant 0 : index
    %c128_29 = arith.constant 128 : index
    %68 = vector.load %arg11[%c0_28, %c128_29] : memref<1x256xf32, #tpu.memory_space<vmem>>, vector<1x32xf32>
    tpu.vector_store %arg11[%c0_28, %c128_29], %67 {strides = array<i32>} : memref<1x256xf32, #tpu.memory_space<vmem>>, vector<1x32xf32>,
    %69 = arith.truncf %67 : vector<1x32xf32> to vector<1x32xbf16>
    %c0_30 = arith.constant 0 : index
    %c0_31 = arith.constant 0 : index
    %70 = vector.load %arg8[%c0_30, %c0_31] : memref<32x128xbf16, #tpu.memory_space<vmem>>, vector<32x128xbf16>
    %cst_32 = arith.constant dense<0.000000e+00> : vector<1x128xf32>
    %71 = tpu.matmul %69, %70, %cst_32 {dimension_numbers = #tpu.dot_dimension_numbers<[1], [0], [0], [1], [0, 0, 1, 1], [], []>} : vector<1x32xbf16>, vector<32x128xbf16>, vector<1x128xf32> -> vector<1x128xf32>
    %c0_33 = arith.constant 0 : index
    %c512 = arith.constant 512 : index
    %72 = vector.load %arg9[%c0_33, %c512] : memref<1x640xf32, #tpu.memory_space<vmem>>, vector<1x128xf32>
    %73 = arith.addf %71, %72 : vector<1x128xf32>
    %cst_34 = arith.constant dense<0xFF800000> : vector<1xf32>
    %74 = vector.multi_reduction <maximumf>, %73, %cst_34 [1] : vector<1x128xf32> to vector<1xf32>
    %75 = vector.shape_cast %74 : vector<1xf32> to vector<1x1xf32>
    %76 = vector.broadcast %75 : vector<1x1xf32> to vector<1x128xf32>
    %77 = arith.subf %73, %76 : vector<1x128xf32>
    %78 = math.exp %77 : vector<1x128xf32>
    %cst_35 = arith.constant dense<0.000000e+00> : vector<1xf32>
    %79 = vector.multi_reduction <add>, %78, %cst_35 [1] : vector<1x128xf32> to vector<1xf32>
    %80 = vector.shape_cast %79 : vector<1xf32> to vector<1x1xf32>
    %81 = math.log %80 : vector<1x1xf32>
    %82 = arith.addf %75, %81 : vector<1x1xf32>
    %83 = vector.broadcast %82 : vector<1x1xf32> to vector<1x128xf32>
    %84 = arith.subf %73, %83 : vector<1x128xf32>
    %85 = vector.shape_cast %84 : vector<1x128xf32> to vector<1x1x128xf32>
    %c0_36 = arith.constant 0 : index
    %c0_37 = arith.constant 0 : index
    %c0_38 = arith.constant 0 : index
    %86 = vector.load %arg10[%c0_36, %c0_37, %c0_38] : memref<1x3x128xf32, #tpu.memory_space<vmem>>, vector<1x1x128xf32>
    tpu.vector_store %arg10[%c0_36, %c0_37, %c0_38], %85 {strides = array<i32>} : memref<1x3x128xf32, #tpu.memory_space<vmem>>, vector<1x1x128xf32>,
    %c0_39 = arith.constant 0 : index
    %c128_40 = arith.constant 128 : index
    %87 = vector.load %arg11[%c0_39, %c128_40] : memref<1x256xf32, #tpu.memory_space<vmem>>, vector<1x128xf32>
    %88 = vector.shape_cast %87 : vector<1x128xf32> to vector<1x1x128xf32>
    %c0_41 = arith.constant 0 : index
    %c1 = arith.constant 1 : index
    %c0_42 = arith.constant 0 : index
    %89 = vector.load %arg10[%c0_41, %c1, %c0_42] : memref<1x3x128xf32, #tpu.memory_space<vmem>>, vector<1x1x128xf32>
    tpu.vector_store %arg10[%c0_41, %c1, %c0_42], %88 {strides = array<i32>} : memref<1x3x128xf32, #tpu.memory_space<vmem>>, vector<1x1x128xf32>,
    %90 = vector.shape_cast %24 : vector<1x128xf32> to vector<1x1x128xf32>
    %c0_43 = arith.constant 0 : index
    %c2 = arith.constant 2 : index
    %c0_44 = arith.constant 0 : index
    %91 = vector.load %arg10[%c0_43, %c2, %c0_44] : memref<1x3x128xf32, #tpu.memory_space<vmem>>, vector<1x1x128xf32>
    tpu.vector_store %arg10[%c0_43, %c2, %c0_44], %90 {strides = array<i32>} : memref<1x3x128xf32, #tpu.memory_space<vmem>>, vector<1x1x128xf32>,
    return
  }
  func.func @transform_0(%arg0: i32, %arg1: memref<1xi32, #tpu.memory_space<smem>>) -> (i32, i32, i32) {
    %0 = arith.index_cast %arg0 : i32 to index
    %1 = memref.load %arg1[%0] : memref<1xi32, #tpu.memory_space<smem>>
    %c0_i32 = arith.constant 0 : i32
    %c0_i32_0 = arith.constant 0 : i32
    %c0_i32_1 = arith.constant 0 : i32
    return %1, %c0_i32, %c0_i32_0 : i32, i32, i32
  }
  func.func @transform_1(%arg0: i32, %arg1: memref<1xi32, #tpu.memory_space<smem>>) -> (i32, i32) {
    %c0_i32 = arith.constant 0 : i32
    %c0_i32_0 = arith.constant 0 : i32
    %c0_i32_1 = arith.constant 0 : i32
    return %c0_i32, %c0_i32_0 : i32, i32
  }
  func.func @transform_2(%arg0: i32, %arg1: memref<1xi32, #tpu.memory_space<smem>>) -> (i32, i32) {
    %c0_i32 = arith.constant 0 : i32
    %c0_i32_0 = arith.constant 0 : i32
    %c0_i32_1 = arith.constant 0 : i32
    return %c0_i32, %c0_i32_0 : i32, i32
  }
  func.func @transform_3(%arg0: i32, %arg1: memref<1xi32, #tpu.memory_space<smem>>) -> (i32, i32) {
    %c0_i32 = arith.constant 0 : i32
    %c0_i32_0 = arith.constant 0 : i32
    %c0_i32_1 = arith.constant 0 : i32
    return %c0_i32, %c0_i32_0 : i32, i32
  }
  func.func @transform_4(%arg0: i32, %arg1: memref<1xi32, #tpu.memory_space<smem>>) -> (i32, i32) {
    %c0_i32 = arith.constant 0 : i32
    %c0_i32_0 = arith.constant 0 : i32
    %c0_i32_1 = arith.constant 0 : i32
    return %c0_i32, %c0_i32_0 : i32, i32
  }
  func.func @transform_5(%arg0: i32, %arg1: memref<1xi32, #tpu.memory_space<smem>>) -> (i32, i32) {
    %c0_i32 = arith.constant 0 : i32
    %c0_i32_0 = arith.constant 0 : i32
    %c0_i32_1 = arith.constant 0 : i32
    return %c0_i32, %c0_i32_0 : i32, i32
  }
  func.func @transform_6(%arg0: i32, %arg1: memref<1xi32, #tpu.memory_space<smem>>) -> (i32, i32) {
    %c0_i32 = arith.constant 0 : i32
    %c0_i32_0 = arith.constant 0 : i32
    %c0_i32_1 = arith.constant 0 : i32
    return %c0_i32, %c0_i32_0 : i32, i32
  }
  func.func @transform_7(%arg0: i32, %arg1: memref<1xi32, #tpu.memory_space<smem>>) -> (i32, i32) {
    %c0_i32 = arith.constant 0 : i32
    %c0_i32_0 = arith.constant 0 : i32
    %c0_i32_1 = arith.constant 0 : i32
    return %c0_i32, %c0_i32_0 : i32, i32
  }
  func.func @transform_8(%arg0: i32, %arg1: memref<1xi32, #tpu.memory_space<smem>>) -> (i32, i32, i32) {
    %c0_i32 = arith.constant 0 : i32
    %c0_i32_0 = arith.constant 0 : i32
    %c0_i32_1 = arith.constant 0 : i32
    return %arg0, %c0_i32, %c0_i32_0 : i32, i32, i32
  }
}

</mosaic_0001>

<bundles_post_ra>
// kernel: tpu_custom_call.1
= control target key start
LH: loop header
LB: loop body
LE: loop exit
PB: predicated region body
PF: predicated region fallthrough
CT: control target
= control target key end

     0   :  { %15 = vsyncpa [#allocation6], 0  ;;  %s1089_s30 = smov [#allocation5]   ;;  %s1264_s0 = inlined_call_operand.<no memory space> [shape: s32[1], index: 0, kind: input, shape index: {}]   ;;  %s1265_s1 = inlined_call_operand.vmem [shape: bf16[64,1,32], index: 1, kind: input, shape index: {}]   ;;  %s1266_s2 = inlined_call_operand.vmem [shape: f32[1,32], index: 2, kind: input, shape index: {}]   ;;  %s1267_s3 = inlined_call_operand.vmem [shape: bf16[10,32], index: 3, kind: input, shape index: {}]   ;;  %s1268_s4 = inlined_call_operand.hbm [shape: bf16[256,384], index: 4, kind: input, shape index: {}]   ;;  %s1269_s5 = inlined_call_operand.vmem [shape: bf16[32,32], index: 5, kind: input, shape index: {}]   ;;  %s1270_s6 = inlined_call_operand.vmem [shape: bf16[32,96], index: 6, kind: input, shape index: {}]   ;;  %s1271_s7 = inlined_call_operand.vmem [shape: bf16[32,128], index: 7, kind: input, shape index: {}]   ;;  %s1272_s8 = inlined_call_operand.vmem [shape: f32[1,640], index: 8, kind: input, shape index: {}]   ;;  %s1273_s9 = inlined_call_operand.vmem [shape: f32[1,3,128], index: 9, kind: output, shape index: {}]  }
   0x1   :  { %s32_s10 = sshll.u32 %s1089_s30, 4  ;;  %s1065_s13 = scalar_lea.hbm %s1268_s4, 6144  ;;  %s33_s10 = int_to_ptr.vmem [resolvable:$true] %s32_s10 }
   0x2   :  { %p1066_p0 = scmp.ne.s32.totalorder %s1268_s4, %s1065_s13  ;;  %p1069_p1 = scmp.lt.u32.totalorder %s1065_s13, %s1268_s4 }
   0x4   :  { %p1071_p2 = pnand %p1069_p1, %p1066_p0 }
   0x6   :  { %1074 = shalt.err (!%p1071_p2)
}
   0x7   :  { %s1075_s18 = scalar_lea.vmem %s33_s10, 6144  ;;  %p1080_p4 = scmp.lt.s32.totalorder %s33_s10, %s33_s10 }
   0x8   :  { %p1076_p3 = scmp.ne.s32.totalorder %s33_s10, %s1075_s18  ;;  %p1081_p5 = scmp.lt.s32.totalorder %s1075_s18, %s1075_s18 }
   0xa   :  { %p1082_p6 = por %p1081_p5, %p1080_p4 }
   0xc   :  { %p1083_p7 = pnand %p1082_p6, %p1076_p3 }
   0xe   :  { %1086 = shalt.err (!%p1083_p7)
}
   0xf   :  { %s1090_s19 = smov 192   ;;  %s1091_s20 = smov 12  }
  0x10   :  { %38 = dma.hbm_to_vmem [thread:$0]  %s1268_s4, 6144, %s33_s10, [#allocation6], %s1090_s19, %s1090_s19, %s1091_s20  }
  0x11   :  { %1087 = dma.done.wait [#allocation6], 6144  }
  0x12   :  { %1088 = vsyncadd [#allocation6], 4294961152  ;;  %v64_v0 = vlaneseq  ;;  %v1092_v1 = vmov 0.0   ;;  %v980_v2 = vld [vmem:[#allocation5 + $0x4] ss:$12 sps:$4 sm:$0xff]   ;;  %p55_p8 = scmp.lt.s32.totalorder %s1264_s0, 63 }
  0x13   :  { %v982_v3 = vld [vmem:[#allocation5] ss:$12 sps:$4 sm:$0xff]   ;;  %432 = vmatprep.subr.bf16.mxu0 %v980_v2  ;;  %v983_v4 = vld [vmem:[#allocation5 + $0x1c] ss:$12 sps:$4 sm:$0xff]   ;;  %v985_v5 = vld [vmem:[#allocation5 + $0x18] ss:$12 sps:$4 sm:$0xff]  }
  0x14   :  { %vm66_vm0 = vcmp.lt.s32.totalorder %v64_v0, 256  ;;  %433 = vmatpush1.bf16.msra.mxu0 %v982_v3  ;;  %v986_v6 = vld [vmem:[#allocation5 + $0x34] ss:$12 sps:$4 sm:$0xff]   ;;  %v988_v7 = vld [vmem:[#allocation5 + $0x30] ss:$12 sps:$4 sm:$0xff]   ;;  %s1277_s0 = smov (!%p55_p8, %s1264_s0), 63 }
  0x15   :  { %68 = vst.msk [vmem:[#allocation2] sm:$0x3] %vm66_vm0, %v1092_v1  ;;  %434 = vmatprep.subr.bf16.mxu0 %v983_v4  ;;  %v989_v8 = vld [vmem:[#allocation5 + $0x4c] ss:$12 sps:$4 sm:$0xff]   ;;  %v991_v9 = vld [vmem:[#allocation5 + $0x48] ss:$12 sps:$4 sm:$0xff]   ;;  %s57_s28 = scalar_lea.vmem %s1265_s1, %s1277_s0 }
  0x16   :  { %v992_v10 = vld [vmem:[#allocation5 + $0x64] ss:$12 sps:$4 sm:$0xff]   ;;  %v994_v11 = vld [vmem:[#allocation5 + $0x60] ss:$12 sps:$4 sm:$0xff]   ;;  %v995_v12 = vld [vmem:[#allocation5 + $0x7c] ss:$12 sps:$4 sm:$0xff]  }
  0x17   :  { %v1167_v13 = vshrl.u32 %v64_v0, 7  ;;  %v997_v14 = vld [vmem:[#allocation5 + $0x78] ss:$12 sps:$4 sm:$0xff]   ;;  %vm1172_vm1 = vcmp.lt.s32.totalorder %v64_v0, 32  ;;  %v998_v16 = vld [vmem:[#allocation5 + $0x94] ss:$12 sps:$4 sm:$0xff]  }
  0x18   :  { %435 = vmatpush1.bf16.msra.mxu0 %v985_v5  ;;  %v1000_v18 = vld [vmem:[#allocation5 + $0x90] ss:$12 sps:$4 sm:$0xff]   ;;  %v1001_v21 = vld [vmem:[#allocation5 + $0xac] ss:$12 sps:$4 sm:$0xff]   ;;  %v1003_v23 = vld [vmem:[#allocation5 + $0xa8] ss:$12 sps:$4 sm:$0xff]  }
  0x19   :  { %436 = vmatprep.subr.bf16.mxu0 %v986_v6  ;;  %v89_v17 = vsub.s32 1, %v1167_v13  ;;  %v69_v19 = vld [vmem:[%s1266_s2] sm:$0x1]  ;;  %v1004_v24 = vld [vmem:[#allocation5 + $0xc4] ss:$12 sps:$4 sm:$0xff]   ;;  %v85_v40 = vsub.s32 0, %v1167_v13 }
  0x1a   :  { %v73_v20 = vld [vmem:[%s57_s28] sm:$0x1]  ;;  %72 = vst.msk [vmem:[#allocation2 + $0x1] sm:$0x1] %vm1172_vm1, %v69_v19  ;;  %v1006_v25 = vld [vmem:[#allocation5 + $0xc0] ss:$12 sps:$4 sm:$0xff]  }
  0x1b   :  { %v74_v22 = vunpack.c.l.bf16 %v73_v20  ;;  %v1007_v26 = vld [vmem:[#allocation5 + $0xdc] ss:$12 sps:$4 sm:$0xff]   ;;  %v1009_v29 = vld [vmem:[#allocation5 + $0xd8] ss:$12 sps:$4 sm:$0xff]   ;;  %v1010_v30 = vld [vmem:[#allocation5 + $0xf4] ss:$12 sps:$4 sm:$0xff]  }
  0x1c   :  { %437 = vmatpush1.bf16.msra.mxu0 %v988_v7  ;;  %v1012_v32 = vld [vmem:[#allocation5 + $0xf0] ss:$12 sps:$4 sm:$0xff]   ;;  %v1013_v33 = vld [vmem:[#allocation5 + $0x10c] ss:$12 sps:$4 sm:$0xff]   ;;  %v1015_v34 = vld [vmem:[#allocation5 + $0x108] ss:$12 sps:$4 sm:$0xff]  }
  0x1d   :  { %438 = vmatprep.subr.bf16.mxu0 %v989_v8  ;;  %79 = vst.msk [vmem:[#allocation2] sm:$0x1] %vm1172_vm1, %v74_v22  ;;  %v1016_v35 = vld [vmem:[#allocation5 + $0x124] ss:$12 sps:$4 sm:$0xff]   ;;  %v1018_v36 = vld [vmem:[#allocation5 + $0x120] ss:$12 sps:$4 sm:$0xff]  }
  0x1e   :  { %v1019_v37 = vld [vmem:[#allocation5 + $0x13c] ss:$12 sps:$4 sm:$0xff]   ;;  %v1021_v38 = vld [vmem:[#allocation5 + $0x138] ss:$12 sps:$4 sm:$0xff]   ;;  %v1022_v39 = vld [vmem:[#allocation5 + $0x154] ss:$12 sps:$4 sm:$0xff]  }
  0x1f   :  { %v1024_v41 = vld [vmem:[#allocation5 + $0x150] ss:$12 sps:$4 sm:$0xff]   ;;  %v1025_v42 = vld [vmem:[#allocation5 + $0x16c] ss:$12 sps:$4 sm:$0xff]   ;;  %v1027_v44 = vld [vmem:[#allocation5 + $0x168] ss:$12 sps:$4 sm:$0xff]  }
  0x20   :  { %439 = vmatpush1.bf16.msra.mxu0 %v991_v9  ;;  %v1190_v46 = vld [vmem:[%s1272_s8] sm:$0x7]  ;;  %vm513_vm2 = vcmask 1040384   ;;  %v1028_v54 = vld [vmem:[#allocation5 + $0xc8] ss:$12 sps:$4 sm:$0xff]   ;;  %vm537_vm3 = vcmask 1044480  }
  0x21   :  { %440 = vmatprep.subr.bf16.mxu0 %v992_v10  ;;  %v420_v47 = vrot.slane %v1190_v46, %v85_v40  ;;  %v1029_v55 = vld [vmem:[#allocation5 + $0x8] ss:$12 sps:$4 sm:$0xff]   ;;  %v1030_v56 = vld [vmem:[#allocation5 + $0xe0] ss:$12 sps:$4 sm:$0xff]   ;;  %908 = vmatprep.subr.bf16.mxu1 %v1028_v54  ;;  %v1032_v58 = vld [vmem:[#allocation5 + $0xf8] ss:$12 sps:$4 sm:$0xff]  }
  0x22   :  { %909 = vmatpush3.bf16.msra.mxu1 %v1029_v55  ;;  %v1031_v57 = vld [vmem:[#allocation5 + $0x20] ss:$12 sps:$4 sm:$0xff]   ;;  %v1033_v59 = vld [vmem:[#allocation5 + $0x38] ss:$12 sps:$4 sm:$0xff]   ;;  %v1034_v60 = vld [vmem:[#allocation5 + $0x110] ss:$12 sps:$4 sm:$0xff]  }
  0x23   :  { %910 = vmatprep.subr.bf16.mxu1 %v1030_v56  ;;  %v1035_v61 = vld [vmem:[#allocation5 + $0x50] ss:$12 sps:$4 sm:$0xff]   ;;  %v1036_v62 = vld [vmem:[#allocation5 + $0x128] ss:$12 sps:$4 sm:$0xff]   ;;  %v1038_v0 = vld [vmem:[#allocation5 + $0x140] ss:$12 sps:$4 sm:$0xff]  }
  0x24   :  { %441 = vmatpush1.bf16.msra.mxu0 %v994_v11  ;;  %v81_v27 = vld [vmem:[#allocation2] sm:$0x3]  ;;  %v1037_v63 = vld [vmem:[#allocation5 + $0x68] ss:$12 sps:$4 sm:$0xff]   ;;  %v1039_v2 = vld [vmem:[#allocation5 + $0x80] ss:$12 sps:$4 sm:$0xff]  }
  0x25   :  { %442 = vmatprep.subr.bf16.mxu0 %v995_v12  ;;  %v90_v28 = vrot.slane %v81_v27, %v89_v17  ;;  %v86_v43 = vrot.slane %v81_v27, %v85_v40  ;;  %v1040_v3 = vld [vmem:[#allocation5 + $0x158] ss:$12 sps:$4 sm:$0xff]   ;;  %v1042_v10 = vld [vmem:[#allocation5 + $0x170] ss:$12 sps:$4 sm:$0xff]   ;;  %vm1093_vm4 = vmmov 0   ;;  %vm533_vm5 = vcmask 80896  }
  0x26   :  { %911 = vmatpush3.bf16.msra.mxu1 %v1031_v57  ;;  %v1041_v4 = vld [vmem:[#allocation5 + $0x98] ss:$12 sps:$4 sm:$0xff]   ;;  %v1043_v11 = vld [vmem:[#allocation5 + $0xb0] ss:$12 sps:$4 sm:$0xff]   ;;  %s1094_s16 = smov 64   ;;  %vm598_vm6 = vcmask 261120  }
  0x27   :  { %v94_v31 = vpack.c.bf16 %v90_v28, %v90_v28  ;;  %v93_v45 = vpack.c.bf16 %v86_v43, %v86_v43  ;;  %912 = vmatprep.subr.bf16.mxu1 %v1032_v58  ;;  %v1044_v12 = vld [vmem:[%s1267_s3] sm:$0x1f]   ;;  %v1046_v22 = vld [vmem:[%s1269_s5 + $0x8] sm:$0xff]   ;;  %s1095_s21 = smov 32   ;;  %s1096_s25 = smov 96  }
  0x28   :  { %443 = vmatpush1.bf16.msra.mxu0 %v997_v14  ;;  %v539_v14 = vsel %vm537_vm3, %v1044_v12, 0  ;;  %v1045_v20 = vld [vmem:[%s1269_s5] sm:$0xff]  }
  0x29   :  { %444 = vmatprep.subr.bf16.mxu0 %v998_v16  ;;  %464 = vmatprep.mubr.bf16.mxu0 %v94_v31 }
  0x2a   :  { %505 = vmatprep.mubr.bf16.mxu1 %v94_v31  ;;  %913 = vmatpush3.bf16.msra.mxu1 %v1033_v59  ;;  %v904_v59 = vld [vmem:[#allocation2 + $0x1] ss:$0 sm:$0xff] }
  0x2b   :  { %914 = vmatprep.subr.bf16.mxu1 %v1034_v60 }
  0x2c   :  { %445 = vmatpush1.bf16.msra.mxu0 %v1000_v18 }
  0x2d   :  { %446 = vmatprep.subr.bf16.mxu0 %v1001_v21 }
  0x2e   :  { %915 = vmatpush3.bf16.msra.mxu1 %v1035_v61 }
  0x2f   :  { %916 = vmatprep.subr.bf16.mxu1 %v1036_v62  ;;  %v1049_v62 = vld [vmem:[%s1271_s7] sm:$0xff]  }
  0x30   :  { %447 = vmatpush1.bf16.msra.mxu0 %v1003_v23  ;;  %v427_v23 = vsub.s32 2, %v1167_v13 }
  0x31   :  { %448 = vmatprep.subr.bf16.mxu0 %v1004_v24 }
  0x32   :  { %917 = vmatpush3.bf16.msra.mxu1 %v1037_v63  ;;  %v1050_v63 = vld [vmem:[%s1271_s7 + $0x8] sm:$0xff]  }
  0x33   :  { %918 = vmatprep.subr.bf16.mxu1 %v1038_v0 }
  0x34   :  { %449 = vmatpush1.bf16.msra.mxu0 %v1006_v25  ;;  %v428_v25 = vrot.slane %v1190_v46, %v427_v23 }
  0x35   :  { %450 = vmatprep.subr.bf16.mxu0 %v1007_v26 }
  0x36   :  { %919 = vmatpush3.bf16.msra.mxu1 %v1039_v2 }
  0x37   :  { %920 = vmatprep.subr.bf16.mxu1 %v1040_v3 }
  0x38   :  { %451 = vmatpush1.bf16.msra.mxu0 %v1009_v29 }
  0x39   :  { %452 = vmatprep.subr.bf16.mxu0 %v1010_v30 }
  0x3a   :  { %921 = vmatpush3.bf16.msra.mxu1 %v1041_v4 }
  0x3b   :  { %922 = vmatprep.subr.bf16.mxu1 %v1042_v10  ;;  %v763_v10 = vld [vmem:[%s1272_s8 + $0x4] sm:$0x1] }
  0x3c   :  { %453 = vmatpush1.bf16.msra.mxu0 %v1012_v32  ;;  %v1047_v32 = vld [vmem:[%s1270_s6] sm:$0xff]  }
  0x3d   :  { %454 = vmatprep.subr.bf16.mxu0 %v1013_v33 }
  0x3e   :  { %923 = vmatpush3.bf16.msra.mxu1 %v1043_v11 }
  0x3f   :  { %941 = vmatprep.subr.bf16.mxu1 %v1092_v1 }
  0x40   :  { %455 = vmatpush1.bf16.msra.mxu0 %v1015_v34 }
  0x41   :  { %456 = vmatprep.subr.bf16.mxu0 %v1016_v35  ;;  %506 = vmatmul.mubr.bf16.vlgmr.msra.gmra.mrb[0].mxu1 %v93_v45 }
  0x42   :  { %942 = vmatpush3.bf16.msra.mxu1 %v539_v14  ;;  %943 = vmatprep.mubr.msk.bf16.mxu1 %vm1093_vm4, %v1092_v1 }
  0x43   :  { %947 = vmatprep.subr.bf16.mxu1 %v1092_v1 }
  0x44   :  { %457 = vmatpush1.bf16.msra.mxu0 %v1018_v36 }
  0x45   :  { %458 = vmatprep.subr.bf16.mxu0 %v1019_v37  ;;  %v1048_v37 = vld [vmem:[%s1270_s6 + $0x8] sm:$0xff]  }
  0x48   :  { %459 = vmatpush1.bf16.msra.mxu0 %v1021_v38  ;;  %v424_v38 = vrot.slane %v1190_v46, %v89_v17 }
  0x49   :  { %460 = vmatprep.subr.bf16.mxu0 %v1022_v39 }
  0x4c   :  { %461 = vmatpush1.bf16.msra.mxu0 %v1024_v41 }
  0x4d   :  { %462 = vmatprep.subr.bf16.mxu0 %v1025_v42 }
  0x50   :  { %463 = vmatpush1.bf16.msra.mxu0 %v1027_v44 }
  0x53   :  { %465 = vmatmul.mubr.bf16.vlgmr.msra.gmra.mrb[0].mxu0 %v93_v45 }
 0x114   :  { %v924_v24 = vpop.f32.mrb[0].mxu1 }
 0x115   :  { %v925_v26 = vpop.f32.mrb[1].mxu1 }
 0x116   :  { %v926_v27 = vadd.f32 %v925_v26, %v924_v24  ;;  %v927_v28 = vpop.f32.mrb[2].mxu1 }
 0x117   :  { %v928_v29 = vpop.f32.mrb[3].mxu1 }
 0x118   :  { %v508_v30 = vadd.f32 %v926_v27, %v428_v25 }
 0x11a   :  { %713 = vrot.lane.b32.xlu1 %v508_v30, %s1094_s16 }
 0x126   :  { %v466_v48 = vpop.f32.mrb[0].mxu0 }
 0x127   :  { %v467_v49 = vadd.f32 %v466_v48, %v420_v47  ;;  %v1193_v50 = vpop.f32.mrb[1].mxu0  ;;  %v649_v48 = vld [vmem:[%s1272_s8 + $0x3] sm:$0x1] }
 0x128   :  { %v470_v51 = vpop.f32.mrb[2].mxu0  ;;  %v469_v39 = vadd.f32 %v1193_v50, %v424_v38 }
 0x129   :  { %v471_v52 = vpop.f32.mrb[3].mxu0  ;;  %v514_v53 = vsel %vm513_vm2, %v467_v49, -inf }
 0x12a   :  { %515 = vmax.xlane.f32.xlu0 %v514_v53 }
 0x18c   :  { %v714_v57 = vpop.permute.xlu1 %713 }
 0x1b7   :  { %v516_v5 = vpop.xlane.xlu0 %515 }
 0x1b8   :  { %v517_v6 = vsub.f32 %v467_v49, %v516_v5 }
 0x1ba   :  { %v518_v7 = vmul.f32 1.442695, %v517_v6 }
 0x1bc   :  { %1051 = vpow2.f32 %v518_v7 }
 0x1c6   :  { %v1052_v8 = vpop.eup %1051 }
 0x1c7   :  { %v520_v9 = vsel %vm513_vm2, %v1052_v8, 0.0 }
 0x1c8   :  { %521 = vadd.xlane.f32.xlu0 %v520_v9 }
 0x255   :  { %v522_v16 = vpop.xlane.xlu0 %521 }
 0x256   :  { %1053 = vrcp.f32 %v522_v16  ;;  %v1097_v16 = vmov 1966171168  }
 0x260   :  { %v1054_v18 = vpop.eup %1053 }
 0x261   :  { %v524_v19 = vmul.f32 %v1054_v18, %v1052_v8  ;;  %v741_v18 = vunpack.c.l.s4 %v1097_v16 }
 0x263   :  { %838 = vst [vmem:[%s1273_s9 + $0x2] sm:$0x1] %v524_v19  ;;  %v525_v21 = vpack.c.bf16 %v524_v19, %v524_v19 }
 0x265   :  { %944 = vmatmul.mubr.msk.bf16.vlgmr.msra.gmra.mrb[4].mxu1 %vm533_vm5, %v525_v21  ;;  %v742_v21 = vunpack.c.0.s8 %v741_v18 }
 0x266   :  { %948 = vmatpush3.bf16.msra.mxu1 %v1045_v20  ;;  %951 = vmatprep.mubr.msk.bf16.mxu1 %vm1093_vm4, %v1092_v1 }
 0x267   :  { %949 = vmatprep.subr.bf16.mxu1 %v1092_v1 }
 0x26a   :  { %950 = vmatpush3.bf16.msra.mxu1 %v1046_v22  ;;  %v745_v22 = vsub.s32 %v742_v21, %v1167_v13 }
 0x26b   :  { %955 = vmatprep.subr.bf16.mxu1 %v1092_v1 }
 0x338   :  { %v575_v31 = vpop.f32.mrb[4].mxu1 }
 0x339   :  { %v581_v33 = vpack.c.bf16 %v575_v31, %v575_v31  ;;  %v945_v34 = vpop.f32.mrb[5].mxu1 }
 0x33a   :  { %v578_v35 = vpop.f32.mrb[6].mxu1 }
 0x33b   :  { %v946_v36 = vpop.f32.mrb[7].mxu1  ;;  %952 = vmatmul.mubr.msk.bf16.vlgmr.msra.gmra.mrb[8].mxu1 %vm598_vm6, %v581_v33 }
 0x33c   :  { %956 = vmatpush3.bf16.msra.mxu1 %v1047_v32  ;;  %959 = vmatprep.mubr.msk.bf16.mxu1 %vm1093_vm4, %v1092_v1 }
 0x33d   :  { %957 = vmatprep.subr.bf16.mxu1 %v1092_v1 }
 0x340   :  { %958 = vmatpush3.bf16.msra.mxu1 %v1048_v37 }
 0x341   :  { %963 = vmatprep.subr.bf16.mxu1 %v1092_v1 }
 0x40e   :  { %v636_v40 = vpop.f32.mrb[8].mxu1 }
 0x40f   :  { %v642_v41 = vadd.f32 %v636_v40, %v469_v39  ;;  %v953_v42 = vpop.f32.mrb[9].mxu1 }
 0x410   :  { %v639_v43 = vpop.f32.mrb[10].mxu1 }
 0x411   :  { %v643_v44 = vmax.f32 %v642_v41, 0.0  ;;  %v954_v45 = vpop.f32.mrb[11].mxu1 }
 0x413   :  { %v644_v47 = vpack.c.bf16 %v643_v44, %v643_v44 }
 0x415   :  { %960 = vmatmul.mubr.msk.bf16.vlgmr.msra.gmra.mrb[12].mxu1 %vm598_vm6, %v644_v47 }
 0x416   :  { %967 = vmatprep.mubr.msk.bf16.mxu1 %vm1093_vm4, %v1092_v1  ;;  %964 = vmatpush3.bf16.msra.mxu1 %v1049_v62 }
 0x417   :  { %965 = vmatprep.subr.bf16.mxu1 %v1092_v1 }
 0x41a   :  { %966 = vmatpush3.bf16.msra.mxu1 %v1050_v63 }
 0x4e8   :  { %v699_v49 = vpop.f32.mrb[12].mxu1 }
 0x4e9   :  { %v700_v17 = vadd.f32 %v699_v49, %v649_v48  ;;  %v961_v46 = vpop.f32.mrb[13].mxu1 }
 0x4ea   :  { %v702_v50 = vpop.f32.mrb[14].mxu1 }
 0x4eb   :  { %v705_v51 = vadd.f32 %v700_v17, %v508_v30  ;;  %v962_v52 = vpop.f32.mrb[15].mxu1 }
 0x4ed   :  { %v903_v53 = vmul.f32 -1.442695, %v705_v51 }
 0x4ef   :  { %1055 = vpow2.f32 %v903_v53 }
 0x4f9   :  { %v1056_v54 = vpop.eup %1055 }
 0x4fa   :  { %v709_v55 = vadd.f32 1.0, %v1056_v54 }
 0x4fc   :  { %1057 = vrcp.f32 %v709_v55 }
 0x506   :  { %v1058_v56 = vpop.eup %1057 }
 0x507   :  { %v716_v58 = vmul.f32 %v1058_v56, %v714_v57  ;;  %v723_v3 = vsub.f32 1.0, %v1058_v56 }
 0x509   :  { %718 = vrot.lane.b32.xlu1 %v716_v58, %s1094_s16 }
 0x50d   :  { %734 = vrot.lane.b32.xlu1 %v904_v59, %s1095_s21 }
 0x57b   :  { %v719_v60 = vpop.permute.xlu1 %718 }
 0x57c   :  { %v721_v61 = vadd.f32 %v719_v60, %v700_v17 }
 0x57e   :  { %1059 = vtanh.f32 %v721_v61 }
 0x57f   :  { %v735_v2 = vpop.permute.xlu1 %734 }
 0x580   :  { %v737_v5 = vmul.f32 %v1058_v56, %v735_v2 }
 0x588   :  { %v1060_v0 = vpop.eup %1059 }
 0x589   :  { %725 = vrot.lane.b32.xlu0 %v1060_v0, %s1096_s25 }
 0x5fb   :  { %v726_v4 = vpop.permute.xlu0 %725 }
 0x5fc   :  { %v728_v6 = vmul.f32 %v726_v4, %v723_v3 }
 0x5fe   :  { %v738_v7 = vadd.f32 %v737_v5, %v728_v6 }
 0x600   :  { %v758_v8 = vpack.c.bf16 %v738_v7, %v738_v7  ;;  %v746_v23 = vrot.slane %v738_v7, %v745_v22 }
 0x602   :  { %765 = vrot.lane.b32.xlu1 %v758_v8, %s1096_s25  ;;  %v753_v24 = vrot.slane %v746_v23, %v745_v22 }
 0x674   :  { %v766_v9 = vpop.permute.xlu1 %765 }
 0x675   :  { %968 = vmatmul.mubr.msk.bf16.vlgmr.msra.gmra.mrb[16].mxu1 %vm598_vm6, %v766_v9 }
 0x748   :  { %v816_v1 = vpop.f32.mrb[16].mxu1 }
 0x749   :  { %v817_v11 = vadd.f32 %v816_v1, %v763_v10  ;;  %v969_v12 = vpop.f32.mrb[17].mxu1 }
 0x74a   :  { %v819_v14 = vpop.f32.mrb[18].mxu1 }
 0x74b   :  { %v970_v19 = vpop.f32.mrb[19].mxu1  ;;  %v822_v20 = vsel %vm513_vm2, %v817_v11, -inf }
 0x74c   :  { %823 = vmax.xlane.f32.xlu1 %v822_v20 }
 0x75d   :  { %754 = vrot.lane.b32.xlu1 %v753_v24, %s1096_s25 }
 0x7d9   :  { %v824_v25 = vpop.xlane.xlu1 %823 }
 0x7da   :  { %v825_v26 = vsub.f32 %v817_v11, %v824_v25 }
 0x7dc   :  { %v826_v27 = vmul.f32 1.442695, %v825_v26 }
 0x7dd   :  { %v755_v28 = vpop.permute.xlu1 %754 }
 0x7de   :  { %1061 = vpow2.f32 %v826_v27  ;;  %757 = vst.msk [vmem:[#allocation2 + $0x1] sm:$0x1] %vm1172_vm1, %v755_v28 }
 0x7e5   :  { %v836_v29 = vld [vmem:[#allocation2 + $0x1] sm:$0x1] }
 0x7e6   :  { %837 = vst [vmem:[%s1273_s9 + $0x1] sm:$0x1] %v836_v29 }
 0x7e8   :  { %v1062_v30 = vpop.eup %1061 }
 0x7e9   :  { %v828_v31 = vsel %vm513_vm2, %v1062_v30, 0.0 }
 0x7ea   :  { %829 = vadd.xlane.f32.xlu0 %v828_v31 }
 0x877   :  { %v830_v13 = vpop.xlane.xlu0 %829 }
 0x878   :  { %1063 = vlog2.f32 %v830_v13 }
 0x882   :  { %v1064_v32 = vpop.eup %1063 }
 0x883   :  { %v832_v33 = vmul.f32 0.6931472, %v1064_v32 }
 0x885   :  { %v833_v34 = vadd.f32 %v832_v33, %v824_v25 }
 0x887   :  { %v834_v35 = vsub.f32 %v817_v11, %v833_v34 }
 0x889   :  { %835 = vst [vmem:[%s1273_s9] sm:$0x1] %v834_v35 }
 0x88a   :  { %843 = vsyncpa [#allocation6], 1 }

</bundles_post_ra>
